<compile_context>
chip_gen: v6e
topology: v6e:2x2x1
jax: 0.10.0
libtpu: 0.0.40
codegen_flags: <defaults>
</compile_context>

<pallas_src>
import functools

import jax
import jax.numpy as jnp
from jax.experimental import pallas as pl
from jax.experimental.pallas import tpu as pltpu

INPUT_SIZE = 28
HIDDEN_SIZE = 128
OUTPUT_SIZE = 10
FUSED_OUT = 2 * HIDDEN_SIZE       # 128 hidden lanes + 128 lanes (logits, zero-padded)
MAX_BLOCK_ROWS = 1024             # batch tile ceiling; fits VMEM on v5e/v6e/v7x


def rnn_step_kernel(x_ref, h_ref, w_x_ref, w_h_ref, b_ref, h_out_ref, o_out_ref):
    """One fused RNN step on a (block_rows,) batch tile.

    x_ref    : (bb, 28)   f32       input tile
    h_ref    : (bb, 128)  f32       previous hidden tile
    w_x_ref  : (28, 256)  bf16/f32  fused [W_xh | W_xo (zero-padded to 128)]
    w_h_ref  : (128, 256) bf16/f32  fused [W_hh | W_ho (zero-padded to 128)]
    b_ref    : (1, 256)   f32       fused [b_i2h | b_i2o | 0]
    h_out_ref: (bb, 128)  f32       relu(hidden')
    o_out_ref: (bb, 128)  f32       lanes [0:10] = logits, rest zero
    """
    cdt = w_x_ref.dtype
    # Only request exact-f32 multi-pass matmul when the operands are f32;
    # bf16 operands always accumulate in f32 via preferred_element_type.
    prec = jax.lax.Precision.HIGHEST if cdt == jnp.float32 else None

    # Cast the MXU operands in-kernel (no wrapper-side pad/cast round-trips).
    # Two MXU passes (K=28 and K=128) cover both heads in one 256-lane f32 acc.
    pre = (jnp.dot(x_ref[...].astype(cdt), w_x_ref[...],
                   preferred_element_type=jnp.float32, precision=prec)
           + jnp.dot(h_ref[...].astype(cdt), w_h_ref[...],
                     preferred_element_type=jnp.float32, precision=prec)
           + b_ref[...])                                      # (bb, 256) f32

    # Lane-aligned register split: ReLU only on the hidden lanes; logits lanes
    # pass through.  Both stores are unmasked, lane-dense 128-wide vst.
    h_out_ref[...] = jnp.maximum(pre[:, :HIDDEN_SIZE], 0.0)
    o_out_ref[...] = pre[:, HIDDEN_SIZE:]


def prepare_params(params, compute_dtype=jnp.bfloat16):
    """One-time fuse of the PyTorch-layout parameters.

    params: (w_i2h (156,128), b_i2h (128,), w_i2o (156,10), b_i2o (10,)),
            all f32, stored (in, out) so x @ W == PyTorch's x @ W.T.

    Returns (w_x (28,256), w_h (128,256), b (1,256)).
    IMPORTANT: columns 128+OUTPUT_SIZE .. 255 of the fused weights and bias are
    EXACTLY ZERO -- that is what keeps lanes 10..127 of the kernel's logits
    slab zero.  Keep that invariant if this function is edited.
    """
    w_i2h, b_i2h, w_i2o, b_i2o = params
    fan_in = INPUT_SIZE + HIDDEN_SIZE
    assert w_i2h.shape == (fan_in, HIDDEN_SIZE)
    assert w_i2o.shape == (fan_in, OUTPUT_SIZE)

    # Pad the logits head to 128 lanes, fuse the two heads -> (156, 256).
    w_o_pad = jnp.zeros((fan_in, FUSED_OUT - HIDDEN_SIZE), jnp.float32)
    w_o_pad = w_o_pad.at[:, :OUTPUT_SIZE].set(w_i2o)
    w_all = jnp.concatenate([w_i2h, w_o_pad], axis=1)         # (156, 256)

    # Split the implicit concat([x, h]) contraction into its x / h parts.
    w_x = w_all[:INPUT_SIZE, :]                               # (28, 256)
    w_h = w_all[INPUT_SIZE:, :]                               # (128, 256)

    b = jnp.zeros((1, FUSED_OUT), jnp.float32)
    b = b.at[0, :HIDDEN_SIZE].set(b_i2h)
    b = b.at[0, HIDDEN_SIZE:HIDDEN_SIZE + OUTPUT_SIZE].set(b_i2o)

    # Weights in the MXU operand dtype; bias stays f32 (added post-accumulation).
    return (w_x.astype(compute_dtype), w_h.astype(compute_dtype), b)


def _pick_block_rows(batch):
    """Largest batch tile that keeps all generations inside VMEM comfortably."""
    if batch <= MAX_BLOCK_ROWS:
        return batch
    for cand in (1024, 512, 256, 128, 64, 32, 16, 8):
        if batch % cand == 0:
            return cand
    return batch  # odd large batch: fall back to a single full-array block


@functools.partial(jax.jit, static_argnames=("block_rows",))
def basic_rnn_forward(x, h, packed, block_rows=None):
    """x: (B, 28) f32, h: (B, 128) f32 -> (output (B, 10) f32, hidden (B, 128) f32)."""
    w_x, w_h, b = packed
    batch = x.shape[0]
    bb = block_rows if block_rows is not None else _pick_block_rows(batch)
    assert batch % bb == 0, "batch must be a multiple of block_rows"
    grid = (batch // bb,)

    wbytes = (w_x.size + w_h.size) * w_x.dtype.itemsize
    flops = 2 * batch * (INPUT_SIZE + HIDDEN_SIZE) * FUSED_OUT
    bytes_accessed = (x.size * 4 + h.size * 4 + wbytes + b.size * 4
                      + 2 * batch * HIDDEN_SIZE * 4)

    h_new, o_slab = pl.pallas_call(
        rnn_step_kernel,
        grid=grid,
        in_specs=[
            pl.BlockSpec((bb, INPUT_SIZE), lambda i: (i, 0)),
            pl.BlockSpec((bb, HIDDEN_SIZE), lambda i: (i, 0)),
            # Constant index maps: weights/bias stay VMEM-resident across blocks.
            pl.BlockSpec((INPUT_SIZE, FUSED_OUT), lambda i: (0, 0)),
            pl.BlockSpec((HIDDEN_SIZE, FUSED_OUT), lambda i: (0, 0)),
            pl.BlockSpec((1, FUSED_OUT), lambda i: (0, 0)),
        ],
        out_specs=(
            pl.BlockSpec((bb, HIDDEN_SIZE), lambda i: (i, 0)),
            pl.BlockSpec((bb, HIDDEN_SIZE), lambda i: (i, 0)),
        ),
        out_shape=(
            jax.ShapeDtypeStruct((batch, HIDDEN_SIZE), jnp.float32),  # hidden'
            jax.ShapeDtypeStruct((batch, HIDDEN_SIZE), jnp.float32),  # logits slab
        ),
        compiler_params=pltpu.CompilerParams(
            dimension_semantics=("parallel",)),       # shards batch over v7x's 2 TCs
        cost_estimate=pl.CostEstimate(
            flops=flops, transcendentals=0, bytes_accessed=bytes_accessed),
    )(x, h, w_x, w_h, b)

    output = o_slab[:, :OUTPUT_SIZE]
    return output, h_new


def init_params(key):
    k1, k2, k3, k4 = jax.random.split(key, 4)
    fan_in = INPUT_SIZE + HIDDEN_SIZE
    bound = 1.0 / jnp.sqrt(fan_in)
    # Stored as (in, out); PyTorch nn.Linear stores (out, in) -- same math via x @ W.
    w_i2h = jax.random.uniform(k1, (fan_in, HIDDEN_SIZE), jnp.float32, -bound, bound)
    b_i2h = jax.random.uniform(k2, (HIDDEN_SIZE,), jnp.float32, -bound, bound)
    w_i2o = jax.random.uniform(k3, (fan_in, OUTPUT_SIZE), jnp.float32, -bound, bound)
    b_i2o = jax.random.uniform(k4, (OUTPUT_SIZE,), jnp.float32, -bound, bound)
    return (w_i2h, b_i2h, w_i2o, b_i2o)


def reference_step(x, h, params):
    """Plain-JAX f32 reference, same math as the PyTorch module."""
    w_i2h, b_i2h, w_i2o, b_i2o = params
    combined = jnp.concatenate([x, h], axis=1)
    out = combined @ w_i2o + b_i2o
    hid = jnp.maximum(combined @ w_i2h + b_i2h, 0.0)
    return out, hid


if __name__ == "__main__":
    key = jax.random.PRNGKey(0)
    kp, kx = jax.random.split(key)
    params = init_params(kp)

    B = 16
    x = jax.random.normal(kx, (B, INPUT_SIZE), jnp.float32)
    h0 = jnp.zeros((B, HIDDEN_SIZE), jnp.float32)          # init_hidden

    # f32 reference, two recurrence steps (exercises both the x and h paths).
    ro1, rh1 = reference_step(x, h0, params)
    ro2, rh2 = reference_step(x, rh1, params)

    # --- Tight test: f32 weights, multi-block grid (block_rows=8 -> grid=(2,)) ---
    packed_f32 = prepare_params(params, compute_dtype=jnp.float32)
    o1, h1 = basic_rnn_forward(x, h0, packed_f32, block_rows=8)
    o2, h2 = basic_rnn_forward(x, h1, packed_f32, block_rows=8)
    jax.block_until_ready((o1, h1, o2, h2))
    assert jnp.allclose(o1, ro1, atol=1e-4, rtol=1e-4), "f32 step-1 output mismatch"
    assert jnp.allclose(h1, rh1, atol=1e-4, rtol=1e-4), "f32 step-1 hidden mismatch"
    assert jnp.allclose(o2, ro2, atol=1e-4, rtol=1e-4), "f32 step-2 output mismatch"
    assert jnp.allclose(h2, rh2, atol=1e-4, rtol=1e-4), "f32 step-2 hidden mismatch"

    # --- Default path: bf16 MXU operands (f32 hidden carried), single block ---
    packed_bf16 = prepare_params(params, compute_dtype=jnp.bfloat16)
    bo1, bh1 = basic_rnn_forward(x, h0, packed_bf16)
    bo2, bh2 = basic_rnn_forward(x, bh1, packed_bf16)
    jax.block_until_ready((bo1, bh1, bo2, bh2))
    assert jnp.allclose(bo1, ro1, atol=5e-2, rtol=5e-2), "bf16 step-1 output mismatch"
    assert jnp.allclose(bh1, rh1, atol=5e-2, rtol=5e-2), "bf16 step-1 hidden mismatch"
    assert jnp.allclose(bo2, ro2, atol=5e-2, rtol=5e-2), "bf16 step-2 output mismatch"
    assert jnp.allclose(bh2, rh2, atol=5e-2, rtol=5e-2), "bf16 step-2 hidden mismatch"

    print("KERNEL_OK")
</pallas_src>

<mosaic_0001>
module attributes {stable_mosaic.version = 11 : i64} {
  func.func @rnn_step_kernel(%arg0: i32, %arg1: memref<8x28xf32, #tpu.memory_space<vmem>>, %arg2: memref<8x128xf32, #tpu.memory_space<vmem>>, %arg3: memref<28x256xf32, #tpu.memory_space<vmem>>, %arg4: memref<128x256xf32, #tpu.memory_space<vmem>>, %arg5: memref<1x256xf32, #tpu.memory_space<vmem>>, %arg6: memref<8x128xf32, #tpu.memory_space<vmem>>, %arg7: memref<8x128xf32, #tpu.memory_space<vmem>>) attributes {dimension_semantics = [#tpu.dimension_semantics<parallel>], iteration_bounds = array<i64: 2>, scalar_prefetch = 0 : i64, scratch_operands = 0 : i64, tpu.core_type = #tpu.core_type<tc>, window_params = [{transform_indices = @transform_0, window_bounds = array<i64: 8, 28>}, {transform_indices = @transform_1, window_bounds = array<i64: 8, 128>}, {pipeline_mode = #tpu.pipeline_mode<synchronous>, transform_indices = @transform_2, window_bounds = array<i64: 28, 256>}, {pipeline_mode = #tpu.pipeline_mode<synchronous>, transform_indices = @transform_3, window_bounds = array<i64: 128, 256>}, {pipeline_mode = #tpu.pipeline_mode<synchronous>, transform_indices = @transform_4, window_bounds = array<i64: 1, 256>}, {transform_indices = @transform_5, window_bounds = array<i64: 8, 128>}, {transform_indices = @transform_6, window_bounds = array<i64: 8, 128>}]} {
    %c0 = arith.constant 0 : index
    %c0_0 = arith.constant 0 : index
    %0 = vector.load %arg1[%c0, %c0_0] : memref<8x28xf32, #tpu.memory_space<vmem>>, vector<8x28xf32>
    %c0_1 = arith.constant 0 : index
    %c0_2 = arith.constant 0 : index
    %1 = vector.load %arg3[%c0_1, %c0_2] : memref<28x256xf32, #tpu.memory_space<vmem>>, vector<28x256xf32>
    %cst = arith.constant dense<0.000000e+00> : vector<8x256xf32>
    %2 = tpu.matmul %0, %1, %cst {dimension_numbers = #tpu.dot_dimension_numbers<[1], [0], [0], [1], [0, 0, 1, 1], [], []>, precision = #tpu.contract_precision<fp32>} : vector<8x28xf32>, vector<28x256xf32>, vector<8x256xf32> -> vector<8x256xf32>
    %c0_3 = arith.constant 0 : index
    %c0_4 = arith.constant 0 : index
    %3 = vector.load %arg2[%c0_3, %c0_4] : memref<8x128xf32, #tpu.memory_space<vmem>>, vector<8x128xf32>
    %c0_5 = arith.constant 0 : index
    %c0_6 = arith.constant 0 : index
    %4 = vector.load %arg4[%c0_5, %c0_6] : memref<128x256xf32, #tpu.memory_space<vmem>>, vector<128x256xf32>
    %cst_7 = arith.constant dense<0.000000e+00> : vector<8x256xf32>
    %5 = tpu.matmul %3, %4, %cst_7 {dimension_numbers = #tpu.dot_dimension_numbers<[1], [0], [0], [1], [0, 0, 1, 1], [], []>, precision = #tpu.contract_precision<fp32>} : vector<8x128xf32>, vector<128x256xf32>, vector<8x256xf32> -> vector<8x256xf32>
    %6 = arith.addf %2, %5 : vector<8x256xf32>
    %c0_8 = arith.constant 0 : index
    %c0_9 = arith.constant 0 : index
    %7 = vector.load %arg5[%c0_8, %c0_9] : memref<1x256xf32, #tpu.memory_space<vmem>>, vector<1x256xf32>
    %8 = vector.broadcast %7 : vector<1x256xf32> to vector<8x256xf32>
    %9 = arith.addf %6, %8 : vector<8x256xf32>
    %10 = vector.extract_strided_slice %9 {offsets = [0, 0], sizes = [8, 128], strides = [1, 1]} : vector<8x256xf32> to vector<8x128xf32>
    %cst_10 = arith.constant 0.000000e+00 : f32
    %11 = vector.broadcast %cst_10 : f32 to vector<8x128xf32>
    %12 = arith.maximumf %10, %11 : vector<8x128xf32>
    %c0_11 = arith.constant 0 : index
    %c0_12 = arith.constant 0 : index
    %13 = vector.load %arg6[%c0_11, %c0_12] : memref<8x128xf32, #tpu.memory_space<vmem>>, vector<8x128xf32>
    tpu.vector_store %arg6[%c0_11, %c0_12], %12 {strides = array<i32>} : memref<8x128xf32, #tpu.memory_space<vmem>>, vector<8x128xf32>,
    %14 = vector.extract_strided_slice %9 {offsets = [0, 128], sizes = [8, 128], strides = [1, 1]} : vector<8x256xf32> to vector<8x128xf32>
    %c0_13 = arith.constant 0 : index
    %c0_14 = arith.constant 0 : index
    %15 = vector.load %arg7[%c0_13, %c0_14] : memref<8x128xf32, #tpu.memory_space<vmem>>, vector<8x128xf32>
    tpu.vector_store %arg7[%c0_13, %c0_14], %14 {strides = array<i32>} : memref<8x128xf32, #tpu.memory_space<vmem>>, vector<8x128xf32>,
    return
  }
  func.func @transform_0(%arg0: i32) -> (i32, i32) {
    %c0_i32 = arith.constant 0 : i32
    %c0_i32_0 = arith.constant 0 : i32
    return %arg0, %c0_i32 : i32, i32
  }
  func.func @transform_1(%arg0: i32) -> (i32, i32) {
    %c0_i32 = arith.constant 0 : i32
    %c0_i32_0 = arith.constant 0 : i32
    return %arg0, %c0_i32 : i32, i32
  }
  func.func @transform_2(%arg0: i32) -> (i32, i32) {
    %c0_i32 = arith.constant 0 : i32
    %c0_i32_0 = arith.constant 0 : i32
    %c0_i32_1 = arith.constant 0 : i32
    return %c0_i32, %c0_i32_0 : i32, i32
  }
  func.func @transform_3(%arg0: i32) -> (i32, i32) {
    %c0_i32 = arith.constant 0 : i32
    %c0_i32_0 = arith.constant 0 : i32
    %c0_i32_1 = arith.constant 0 : i32
    return %c0_i32, %c0_i32_0 : i32, i32
  }
  func.func @transform_4(%arg0: i32) -> (i32, i32) {
    %c0_i32 = arith.constant 0 : i32
    %c0_i32_0 = arith.constant 0 : i32
    %c0_i32_1 = arith.constant 0 : i32
    return %c0_i32, %c0_i32_0 : i32, i32
  }
  func.func @transform_5(%arg0: i32) -> (i32, i32) {
    %c0_i32 = arith.constant 0 : i32
    %c0_i32_0 = arith.constant 0 : i32
    return %arg0, %c0_i32 : i32, i32
  }
  func.func @transform_6(%arg0: i32) -> (i32, i32) {
    %c0_i32 = arith.constant 0 : i32
    %c0_i32_0 = arith.constant 0 : i32
    return %arg0, %c0_i32 : i32, i32
  }
}

</mosaic_0001>

<bundles_post_ra>
// kernel: basic_rnn_forward.1
= control target key start
LH: loop header
LB: loop body
LE: loop exit
PB: predicated region body
PF: predicated region fallthrough
CT: control target
= control target key end

     0   :  { %s3349_s0 = inlined_call_operand.hbm [shape: f32[16,28], index: 0, kind: input, shape index: {}]   ;;  %s3350_s1 = inlined_call_operand.hbm [shape: f32[16,128], index: 1, kind: input, shape index: {}]   ;;  %s3351_s2 = inlined_call_operand.hbm [shape: f32[28,256], index: 2, kind: input, shape index: {}]   ;;  %s3352_s3 = inlined_call_operand.hbm [shape: f32[128,256], index: 3, kind: input, shape index: {}]   ;;  %s3353_s4 = inlined_call_operand.vmem [shape: f32[1,256], index: 4, kind: input, shape index: {}]   ;;  %s3354_s5 = inlined_call_operand.hbm [shape: f32[16,128], index: 5, kind: output, shape index: {0}]   ;;  %s3355_s6 = inlined_call_operand.hbm [shape: f32[16,128], index: 6, kind: output, shape index: {1}]  }
   0x1   :  { %3425 = sst [smem:[#allocation40_spill]] %s3351_s2 }
   0x2   :  { %3426 = sst [smem:[#allocation41_spill]] %s3352_s3 }
   0x3   :  { %12 = vsyncpa [#allocation3], 0 }
   0x4   :  { %14 = vsyncpa [#allocation3 + $0x1], 0 }
   0x5   :  { %15 = vsyncpa [#allocation6], 0 }
   0x6   :  { %17 = vsyncpa [#allocation6 + $0x1], 0 }
   0x7   :  { %18 = vsyncpa [#allocation9], 0 }
   0x8   :  { %19 = vsyncpa [#allocation4], 0 }
   0x9   :  { %21 = vsyncpa [#allocation4 + $0x1], 0 }
   0xa   :  { %22 = vsyncpa [#allocation12], 0 }
   0xb   :  { %24 = vsyncpa [#allocation12 + $0x1], 0  ;;  %s2350_s21 = smov 0   ;;  %s2352_s22 = smov 0  }
   0xc   :  { %s2354_s23 = smov 0   ;;  %s2356_s24 = smov 0  }
   0xd LB: > { %s2371_s25 = sadd.s32 4294967295, %s2304_s24   ;;  %s1988_s26 = sadd.s32 4294967294, %s2304_s24   ;;  %s2304_s24 = sphi %s2356_s24, %s3533_s24   ;;  %s2300_s23 = sphi %s2354_s23, %s3532_s23   ;;  %s2296_s22 = sphi %s2352_s22, %s3531_s22   ;;  %s2292_s21 = sphi %s2350_s21, %s3530_s21  }
   0xe   : > { %p50_p0 = scmp.ne.s32.totalorder %s2296_s22, %s2292_s21  ;;  %p3356_p1 = scmp.eq.s32.totalorder %s2371_s25, 0 }
   0xf   : > { %p169_p3 = scmp.eq.s32.totalorder %s1988_s26, 1  ;;  %p1989_p5 = scmp.ge.s32.totalorder %s2304_s24, 1 }
  0x10   : > { %p2380_p4 = por %p3356_p1, %p50_p0  ;;  %p202_p7 = scmp.lt.s32.totalorder %s2304_s24, 3 }
  0x11   : > { %p2385_p6 = por %p169_p3, %p50_p0  ;;  %s2306_s30 = smov [#allocation7]  }
  0x12   : > { %s3427_s27 = scalar_select %p2380_p4, 1, 0 }
  0x13   : > { %s3428_s28 = scalar_select %p2385_p6, 1, 0 }
  0x14   : > { %p2390_p8 = pnand %p1989_p5, %p202_p7  ;;  %s214_s7 = sshll.u32 %s2306_s30, 4  ;;  %s215_s7 = int_to_ptr.vmem [resolvable:$true] %s214_s7 }
  0x15   : > { %s2307_s9 = smov [#allocation8]   ;;  %s2101_s11 = scalar_lea.vmem %s215_s7, 1024 }
  0x16   : > { %s3429_s29 = scalar_select %p2390_p8, 1, 0 }
  0x17   : > { %p2026_p9 = pneg %p2390_p8  ;;  %s227_s10 = sshll.u32 %s2307_s9, 4  ;;  %s228_s10 = int_to_ptr.vmem [resolvable:$true] %s227_s10 }
  0x18   : > { %p2102_p13 = scmp.ne.s32.totalorder %s215_s7, %s2101_s11  ;;  %p2109_p5 = scmp.lt.s32.totalorder %s215_s7, %s215_s7 }
  0x19   : > { %p2399_p11 = pnand %p2026_p9, %p3356_p1  ;;  %p2110_p7 = scmp.lt.s32.totalorder %s2101_s11, %s2101_s11 }
  0x1b   : > { %p2092_p12 = pneg %p2399_p11  ;;  %p2111_p10 = por %p2110_p7, %p2109_p5 }
  0x1d   : > { %p2104_p0 = pnand %p2102_p13, %p2092_p12 }
  0x1f   : > { %p2105_p3 = pneg %p2104_p0 }
  0x21   : > { %p2112_p9 = pnand %p2111_p10, %p2105_p3 }
  0x23   : > { %2115 = shalt.err (!%p2112_p9)
}
  0x24   : > { %s2308_s12 = smov 256   ;;  %s2309_s13 = smov 16  }
  0x25   : > { %s3431_s2 = sld [smem:[#allocation40_spill]]  ;;  %s2127_s16 = scalar_lea.vmem %s228_s10, 4096 }
  0x26   : > { %p2128_p1 = scmp.ne.s32.totalorder %s228_s10, %s2127_s16  ;;  %p2135_p2 = scmp.lt.s32.totalorder %s228_s10, %s228_s10 }
  0x27   : > { %p2136_p6 = scmp.lt.s32.totalorder %s2127_s16, %s2127_s16 }
  0x28   : > { %p2130_p13 = pnand %p2128_p1, %p2092_p12 }
  0x29   : > { %p2137_p5 = por %p2136_p6, %p2135_p2 }
  0x2a   : > { %p2131_p0 = pneg %p2130_p13 }
  0x2b   : > { %2029 = dma.hbm_to_vmem [thread:$0]  (!%p2399_p11), %s3431_s2, 1024, %s215_s7, [#allocation6], %s2308_s12, %s2308_s12, %s2309_s13  }
  0x2c   : > { %p2138_p10 = pnand %p2137_p5, %p2131_p0 }
  0x2e   : > { %2141 = shalt.err (!%p2138_p10)
}
  0x2f   : > { %s3432_s3 = sld [smem:[#allocation41_spill]]  ;;  %s2422_s19 = sadd.s32 1, %s2304_s24  }
  0x30   : > { %s37_s20 = sadd.s32 1, %s2300_s23  ;;  %s34_s26 = ssub.s32 %s2304_s24, %s2422_s19 }
  0x31   : > { %p44_p1 = scmp.ne.s32.totalorder %s2300_s23, %s2296_s22  ;;  %p35_p2 = scmp.eq.s32.totalorder %s34_s26, 0 }
  0x32   : > { %p45_p6 = scmp.eq.s32.totalorder %s2304_s24, 0  ;;  %p3433_p12 = scmp.eq.s32.totalorder %s2371_s25, 1 }
  0x33   : > { %p2049_p7 = scmp.lt.s32.totalorder %s2304_s24, 2  ;;  %s244_s8 = sand.u32 1, %s2300_s23  }
  0x34   : > { %p2432_p3 = por %p3433_p12, %p44_p1  ;;  %p46_p9 = por %p45_p6, %p44_p1 }
  0x35   : > { %2032 = dma.hbm_to_vmem [thread:$0]  (!%p2399_p11), %s3432_s3, 4096, %s228_s10, [#allocation9], %s2308_s12, %s2308_s12, %s2309_s13  }
  0x36   : > { %s3434_s30 = scalar_select %p2432_p3, 1, 0 }
  0x37   : > { %s2438_s7 = scalar_select %p35_p2, %s2300_s23, %s37_s20  }
  0x38   : > { %s2441_s9 = sshll.u32 %s244_s8, 3  ;;  %s1994_s10 = sshll.u32 %s2304_s24, 7 }
  0x39   : > { %3435 = sst [smem:[#allocation19_spill]] %s2438_s7  ;;  %s2447_s13 = scalar_lea.hbm %s3349_s0, %s1994_s10 }
  0x3a   : > { %s248_s14 = scalar_lea.vmem [#allocation2], %s2441_s9  ;;  %p2452_p11 = pnand %p2049_p7, %p46_p9 }
  0x3b   : > { %s255_s15 = sshll.u32 %s248_s14, 4  ;;  %s2459_s20 = scalar_lea.hbm %s3350_s1, %s1994_s10  ;;  %s2450_s15 = int_to_ptr.vmem [resolvable:$true] %s255_s15 }
  0x3c   : > { %s262_s26 = sand.u32 1, %s2304_s24   ;;  %s245_s11 = scalar_lea.sflag [#allocation3], %s244_s8 }
  0x3d   : > { %s2142_s12 = scalar_lea.hbm %s2447_s13, 128  ;;  %p2144_p0 = pneg %p2452_p11 }
  0x3e   : > { %p2143_p13 = scmp.ne.s32.totalorder %s2447_s13, %s2142_s12  ;;  %s2147_s3 = scalar_lea.hbm %s3349_s0, 256 }
  0x3f   : > { %p2148_p1 = scmp.lt.s32.totalorder %s2447_s13, %s3349_s0  ;;  %p2149_p2 = scmp.lt.s32.totalorder %s2147_s3, %s2142_s12 }
  0x40   : > { %p2145_p5 = pnand %p2144_p0, %p2143_p13 }
  0x41   : > { %p2150_p6 = por %p2149_p2, %p2148_p1 }
  0x42   : > { %p2146_p10 = pneg %p2145_p5 }
  0x44   : > { %p2151_p12 = pnand %p2150_p6, %p2146_p10 }
  0x46   : > { %2154 = shalt.err (!%p2151_p12)
}
  0x47   : > { %s2155_s8 = scalar_lea.vmem %s2450_s15, 128  ;;  %s2310_s2 = smov [#allocation2]  }
  0x48   : > { %p2156_p7 = scmp.ne.s32.totalorder %s2450_s15, %s2155_s8  ;;  %s2160_s10 = sshll.u32 %s2310_s2, 4  ;;  %s2161_s10 = int_to_ptr.vmem [resolvable:$false] %s2160_s10 }
  0x49   : > { %s2162_s18 = scalar_lea.vmem %s2161_s10, 256  ;;  %p2163_p5 = scmp.lt.s32.totalorder %s2450_s15, %s2161_s10 }
  0x4a   : > { %p2158_p9 = pnand %p2156_p7, %p2144_p0  ;;  %p2164_p3 = scmp.lt.s32.totalorder %s2162_s18, %s2155_s8 }
  0x4c   : > { %p2159_p13 = pneg %p2158_p9  ;;  %p2165_p4 = por %p2164_p3, %p2163_p5 }
  0x4e   : > { %p2166_p1 = pnand %p2165_p4, %p2159_p13 }
  0x50   : > { %2169 = shalt.err (!%p2166_p1)
}
  0x51   : > { %2036 = dma.hbm_to_vmem [thread:$0]  (!%p2452_p11), %s2447_s13, 128, %s2450_s15, %s245_s11  }
  0x52   : > { %s266_s3 = scalar_lea.vmem [#allocation5], %s2441_s9  ;;  %s263_s12 = scalar_lea.sflag [#allocation6], %s262_s26 }
  0x53   : > { %s273_s7 = sshll.u32 %s266_s3, 4  ;;  %s2170_s14 = scalar_lea.hbm %s2459_s20, 128  ;;  %s274_s7 = int_to_ptr.vmem [resolvable:$true] %s273_s7 }
  0x54   : > { %p2171_p3 = scmp.ne.s32.totalorder %s2459_s20, %s2170_s14  ;;  %s2175_s2 = scalar_lea.hbm %s3350_s1, 256 }
  0x55   : > { %p2176_p2 = scmp.lt.s32.totalorder %s2459_s20, %s3350_s1  ;;  %p2177_p6 = scmp.lt.s32.totalorder %s2175_s2, %s2170_s14 }
  0x56   : > { %p2173_p4 = pnand %p2171_p3, %p2144_p0 }
  0x57   : > { %p2178_p12 = por %p2177_p6, %p2176_p2 }
  0x58   : > { %p2174_p10 = pneg %p2173_p4 }
  0x5a   : > { %p2179_p7 = pnand %p2178_p12, %p2174_p10 }
  0x5c   : > { %2182 = shalt.err (!%p2179_p7)
}
  0x5d   : > { %s2183_s9 = scalar_lea.vmem %s274_s7, 128  ;;  %s2311_s13 = smov [#allocation5]  }
  0x5e   : > { %p2184_p9 = scmp.ne.s32.totalorder %s274_s7, %s2183_s9  ;;  %s2188_s15 = sshll.u32 %s2311_s13, 4  ;;  %s2189_s15 = int_to_ptr.vmem [resolvable:$false] %s2188_s15 }
  0x5f   : > { %s2190_s26 = scalar_lea.vmem %s2189_s15, 256  ;;  %p2191_p1 = scmp.lt.s32.totalorder %s274_s7, %s2189_s15 }
  0x60   : > { %p2186_p13 = pnand %p2184_p9, %p2144_p0  ;;  %p2192_p3 = scmp.lt.s32.totalorder %s2190_s26, %s2183_s9 }
  0x62   : > { %p2187_p5 = pneg %p2186_p13  ;;  %p2193_p4 = por %p2192_p3, %p2191_p1 }
  0x64   : > { %p2194_p8 = pnand %p2193_p4, %p2187_p5 }
  0x66   : > { %2197 = shalt.err (!%p2194_p8)
}
  0x67   : > { %2039 = dma.hbm_to_vmem [thread:$0]  (!%p2452_p11), %s2459_s20, 128, %s274_s7, %s263_s12  }
  0x68   : > { %p3437_p10 = scmp.ne.s32.totalorder %s3429_s29, 0 }
  0x6a   : > { %282 = sbr.rel (%p3437_p10) target bundleno = 505 (0x1f9), region = 40 }
  0x6f   : > { %s2510_s11 = sand.u32 1, %s2296_s22   ;;  %p3438_p0 = scmp.ne.s32.totalorder %s3427_s27, 0 }
  0x70   : > { %s2513_s3 = sshll.u32 %s2510_s11, 3  ;;  %s285_s14 = scalar_lea.sflag [#allocation3], %s2510_s11 }
  0x71   : > { %s288_s17 = scalar_lea.vmem [#allocation2], %s2513_s3 }
  0x72   : > { %2267 = dma.done.wait (%p3438_p0), %s285_s14, 128  }
  0x73   : > { %2269 = vsyncadd (%p3438_p0), %s285_s14, 4294967168  ;;  %s293_s29 = sand.u32 1, %s2371_s25   ;;  %s297_s20 = scalar_lea.vmem [#allocation5], %s2513_s3 }
  0x74   : > { %s294_s16 = scalar_lea.sflag [#allocation6], %s293_s29 }
  0x75   : > { %2271 = dma.done.wait (%p3438_p0), %s294_s16, 128  }
  0x76   : > { %2273 = vsyncadd (%p3438_p0), %s294_s16, 4294967168  ;;  %p3439_p8 = scmp.eq.s32.totalorder %s2371_s25, 0 }
  0x78   : > { %2275 = dma.done.wait (%p3439_p8), [#allocation6], 1024   ;;  %p3440_p11 = pmov %p3439_p8 }
  0x79   : > { %p3441_p2 = pmov %p3439_p8 }
  0x7a   : > { %2277 = vsyncadd (%p3440_p11), [#allocation6], 4294966272 }
  0x7b   : > { %2279 = dma.done.wait (%p3441_p2), [#allocation9], 4096   ;;  %p3442_p6 = pmov %p3441_p2 }
  0x7c   : > { %v3374_v0 = vmov 0.0   ;;  %v385_v1 = vld [vmem:[#allocation8 + $0xf8] sm:$0xff]  ;;  %v384_v2 = vld [vmem:[#allocation8 + $0xf0] sm:$0xff]  ;;  %v383_v3 = vld [vmem:[#allocation8 + $0xe8] sm:$0xff]  ;;  %vm1245_vm0 = vcmask 1043456   ;;  %vm1241_vm1 = vcmask 228352  }
  0x7d   : > { %2281 = vsyncadd (%p3442_p6), [#allocation9], 4294963200  ;;  %482 = vmatprep.mubr.f32.mxu0 %v3374_v0  ;;  %718 = vmatprep.mubr.f32.mxu1 %v3374_v0  ;;  %v2537_v4 = vand.u32 4294901760, %v385_v1  ;;  %v2539_v5 = vand.u32 4294901760, %v384_v2  ;;  %v2541_v6 = vand.u32 4294901760, %v383_v3  ;;  %v382_v7 = vld [vmem:[#allocation8 + $0xe0] sm:$0xff] }
  0x7e   : > { %v381_v8 = vld [vmem:[#allocation8 + $0xd8] sm:$0xff]  ;;  %v380_v9 = vld [vmem:[#allocation8 + $0xd0] sm:$0xff]  ;;  %v2543_v10 = vand.u32 4294901760, %v382_v7  ;;  %v379_v13 = vld [vmem:[#allocation8 + $0xc8] sm:$0xff]  ;;  %s2006_s12 = sshll.u32 %s2371_s25, 7  ;;  %s336_s8 = scalar_lea.vmem [#allocation10], %s2513_s3 }
  0x7f   : > { %v2545_v11 = vand.u32 4294901760, %v381_v8  ;;  %v2547_v12 = vand.u32 4294901760, %v380_v9  ;;  %v378_v14 = vld [vmem:[#allocation8 + $0xc0] sm:$0xff]  ;;  %v377_v15 = vld [vmem:[#allocation8 + $0xb8] sm:$0xff]  ;;  %387 = vmatprep.subr.mxu0 %v2537_v4  ;;  %v2550_v16 = vand.u32 4294901760, %v379_v13  ;;  %v2557_v19 = vsub.f32 %v385_v1, %v2537_v4  ;;  %v2559_v20 = vld [vmem:[#allocation8 + $0xb0] sm:$0xff]  ;;  %s3278_s15 = scalar_lea.hbm %s3354_s5, %s2006_s12  ;;  %s3285_s14 = scalar_lea.hbm %s3355_s6, %s2006_s12 }
  0x80   : > { %v2552_v17 = vand.u32 4294901760, %v378_v14  ;;  %v2554_v18 = vand.u32 4294901760, %v377_v15  ;;  %v2561_v21 = vld [vmem:[#allocation8 + $0xa8] sm:$0xff]  ;;  %v2563_v22 = vld [vmem:[#allocation8 + $0xa0] sm:$0xff]  ;;  %389 = vmatpush1.msra.mxu0 %v2539_v5  ;;  %v2567_v23 = vand.u32 4294901760, %v2559_v20  ;;  %v2570_v24 = vsub.f32 %v384_v2, %v2539_v5  ;;  %v2578_v27 = vld [vmem:[#allocation8 + $0x98] sm:$0xff] }
  0x81   : > { %v2573_v25 = vand.u32 4294901760, %v2561_v21  ;;  %v2576_v26 = vsub.f32 %v383_v3, %v2541_v6  ;;  %v2580_v28 = vld [vmem:[#allocation8 + $0x90] sm:$0xff]  ;;  %v2582_v29 = vld [vmem:[#allocation8 + $0x88] sm:$0xff]  ;;  %391 = vmatprep.subr.mxu0 %v2541_v6  ;;  %v3372_v30 = vand.u32 4294901760, %v2557_v19  ;;  %v2587_v31 = vand.u32 4294901760, %v2563_v22  ;;  %v2604_v38 = vld [vmem:[#allocation8 + $0x80] sm:$0xff] }
  0x82   : > { %v2590_v32 = vsub.f32 %v382_v7, %v2543_v10  ;;  %v2593_v33 = vand.u32 4294901760, %v2578_v27  ;;  %393 = vmatpush1.msra.mxu0 %v2543_v10  ;;  %v3371_v34 = vand.u32 4294901760, %v2570_v24  ;;  %v2599_v36 = vsub.f32 %v381_v8, %v2545_v11  ;;  %v2628_v47 = vld [vmem:[#allocation8 + $0x78] sm:$0xff]  ;;  %v2638_v52 = vld [vmem:[#allocation8 + $0x70] sm:$0xff]  ;;  %v2645_v57 = vld [vmem:[#allocation8 + $0x68] sm:$0xff]  ;;  %s1831_s2 = sshll.u32 %s336_s8, 4  ;;  %s3280_s2 = int_to_ptr.vmem [resolvable:$true] %s1831_s2 }
  0x83   : > { %3443 = vst [vmem:[#allocation20_spill] sm:$0xff] %v2587_v31  ;;  %v3369_v35 = vand.u32 4294901760, %v2576_v26  ;;  %v2602_v37 = vand.u32 4294901760, %v2580_v28  ;;  %395 = vmatprep.subr.mxu0 %v2545_v11  ;;  %v497_v39 = vsub.f32 %v2557_v19, %v3372_v30  ;;  %v2612_v41 = vsub.f32 %v380_v9, %v2547_v12  ;;  %v2657_v62 = vld [vmem:[#allocation8 + $0x60] sm:$0xff]  ;;  %v2669_v7 = vld [vmem:[#allocation8 + $0x58] sm:$0xff]  ;;  %s343_s10 = scalar_lea.vmem [#allocation11], %s2513_s3 }
  0x84   : > { %3444 = vst [vmem:[#allocation21_spill] sm:$0xff] %v2593_v33  ;;  %v3367_v40 = vand.u32 4294901760, %v2590_v32  ;;  %v2615_v42 = vand.u32 4294901760, %v2582_v29  ;;  %397 = vmatpush1.msra.mxu0 %v2547_v12  ;;  %v503_v43 = vsub.f32 %v2570_v24, %v3371_v34  ;;  %v3366_v45 = vand.u32 4294901760, %v2599_v36  ;;  %v2770_v34 = vld [vmem:[#allocation8 + $0x20] sm:$0xff]  ;;  %s1844_s18 = sshll.u32 %s343_s10, 4  ;;  %s3287_s18 = int_to_ptr.vmem [resolvable:$true] %s1844_s18 }
  0x85   : > { %3445 = vst [vmem:[#allocation22_spill] sm:$0xff] %v2602_v37  ;;  %v509_v44 = vsub.f32 %v2576_v26, %v3369_v35  ;;  %v2626_v46 = vsub.f32 %v379_v13, %v2550_v16  ;;  %399 = vmatprep.subr.mxu0 %v2550_v16  ;;  %v498_v48 = vand.u32 4294901760, %v497_v39  ;;  %v3364_v50 = vand.u32 4294901760, %v2612_v41  ;;  %v2760_v35 = vld [vmem:[#allocation8 + $0x28] sm:$0xff]  ;;  %s1813_s3 = scalar_lea.sflag [#allocation4], %s2510_s11  ;;  %p3526_p7 = scmp.ne.s32.totalorder %s3434_s30, 0 }
  0x86   : > { %3446 = vst [vmem:[#allocation23_spill] sm:$0xff] %v2615_v42  ;;  %v515_v49 = vsub.f32 %v2590_v32, %v3367_v40  ;;  %v2636_v51 = vand.u32 4294901760, %v2604_v38  ;;  %401 = vmatpush1.msra.mxu0 %v2552_v17  ;;  %v504_v53 = vand.u32 4294901760, %v503_v43  ;;  %v521_v55 = vsub.f32 %v2599_v36, %v3366_v45  ;;  %v2747_v45 = vld [vmem:[#allocation8 + $0x30] sm:$0xff]  ;;  %s2313_s29 = smov [#allocation10]  }
  0x87   : > { %v510_v54 = vand.u32 4294901760, %v509_v44  ;;  %v3362_v56 = vand.u32 4294901760, %v2626_v46  ;;  %403 = vmatprep.subr.mxu0 %v2554_v18  ;;  %499 = vmatprep.subr.mxu1 %v498_v48  ;;  %v527_v59 = vsub.f32 %v2612_v41, %v3364_v50  ;;  %v2652_v60 = vsub.f32 %v378_v14, %v2552_v17  ;;  %s2202_s16 = sshll.u32 %s2313_s29, 4  ;;  %s2203_s16 = int_to_ptr.vmem [resolvable:$false] %s2202_s16 }
  0x88   : > { %3447 = vst [vmem:[#allocation24_spill] sm:$0xff] %v2636_v51  ;;  %v516_v58 = vand.u32 4294901760, %v515_v49  ;;  %v2655_v61 = vand.u32 4294901760, %v2628_v47  ;;  %405 = vmatpush1.msra.mxu0 %v2567_v23  ;;  %505 = vmatpush1.msra.mxu1 %v504_v53  ;;  %v522_v63 = vand.u32 4294901760, %v521_v55  ;;  %v2664_v2 = vsub.f32 %v377_v15, %v2554_v18  ;;  %v2680_v15 = vld [vmem:[#allocation8 + $0x50] sm:$0xff]  ;;  %p2205_p5 = scmp.lt.s32.totalorder %s3280_s2, %s2203_s16 }
  0x89   : > { %v533_v1 = vsub.f32 %v2626_v46, %v3362_v56  ;;  %v2667_v3 = vand.u32 4294901760, %v2638_v52  ;;  %407 = vmatprep.subr.mxu0 %v2573_v25  ;;  %511 = vmatprep.subr.mxu1 %v510_v54  ;;  %v528_v8 = vand.u32 4294901760, %v527_v59  ;;  %v3361_v9 = vand.u32 4294901760, %v2652_v60 }
  0x8a   : > { %3448 = vst [vmem:[#allocation25_spill] sm:$0xff] %v2655_v61  ;;  %v2675_v13 = vsub.f32 %v2559_v20, %v2567_v23  ;;  %v2678_v14 = vand.u32 4294901760, %v2645_v57  ;;  %409 = vmatpush1.msra.mxu0 %v2587_v31  ;;  %517 = vmatpush1.msra.mxu1 %v516_v58  ;;  %v3360_v43 = vand.u32 4294901760, %v2664_v2  ;;  %v2686_v44 = vsub.f32 %v2561_v21, %v2573_v25  ;;  %v2703_v21 = vld [vmem:[#allocation8 + $0x48] sm:$0xff] }
  0x8b   : > { %3449 = vst [vmem:[#allocation26_spill] sm:$0xff] %v2667_v3  ;;  %v534_v39 = vand.u32 4294901760, %v533_v1  ;;  %v2689_v48 = vand.u32 4294901760, %v2657_v62  ;;  %411 = vmatprep.subr.mxu0 %v2593_v33  ;;  %523 = vmatprep.subr.mxu1 %v522_v63  ;;  %v539_v20 = vsub.f32 %v2652_v60, %v3361_v9  ;;  %v2698_v53 = vsub.f32 %v2563_v22, %v2587_v31  ;;  %v2726_v9 = vld [vmem:[#allocation8 + $0x40] sm:$0xff] }
  0x8c   : > { %3450 = vst [vmem:[#allocation27_spill] sm:$0xff] %v2678_v14  ;;  %v3363_v49 = vand.u32 4294901760, %v2675_v13  ;;  %v2701_v54 = vand.u32 4294901760, %v2669_v7  ;;  %413 = vmatpush1.msra.mxu0 %v2602_v37  ;;  %529 = vmatpush1.msra.mxu1 %v528_v8  ;;  %v545_v55 = vsub.f32 %v2664_v2, %v3360_v43  ;;  %v3365_v58 = vand.u32 4294901760, %v2686_v44 }
  0x8d   : > { %3451 = vst [vmem:[#allocation28_spill] sm:$0xff] %v2689_v48  ;;  %v2712_v59 = vsub.f32 %v2578_v27, %v2593_v33  ;;  %v2715_v22 = vand.u32 4294901760, %v2680_v15  ;;  %415 = vmatprep.subr.mxu0 %v2615_v42  ;;  %535 = vmatprep.subr.mxu1 %v534_v39  ;;  %v540_v63 = vand.u32 4294901760, %v539_v20  ;;  %v3368_v8 = vand.u32 4294901760, %v2698_v53 }
  0x8e   : > { %3452 = vst [vmem:[#allocation29_spill] sm:$0xff] %v2701_v54  ;;  %v551_v1 = vsub.f32 %v2675_v13, %v3363_v49  ;;  %v2724_v43 = vsub.f32 %v2580_v28, %v2602_v37  ;;  %417 = vmatpush1.msra.mxu0 %v2636_v51  ;;  %v546_v27 = vand.u32 4294901760, %v545_v55  ;;  %v557_v39 = vsub.f32 %v2686_v44, %v3365_v58  ;;  %v2736_v49 = vld [vmem:[#allocation8 + $0x38] sm:$0xff] }
  0x8f   : > { %3453 = vst [vmem:[#allocation30_spill] sm:$0xff] %v2715_v22  ;;  %v3370_v20 = vand.u32 4294901760, %v2712_v59  ;;  %v2734_v56 = vand.u32 4294901760, %v2703_v21  ;;  %541 = vmatpush1.msra.mxu1 %v540_v63  ;;  %419 = vmatprep.subr.mxu0 %v2655_v61  ;;  %v563_v50 = vsub.f32 %v2698_v53, %v3368_v8  ;;  %v2745_v58 = vsub.f32 %v2582_v29, %v2615_v42 }
  0x90   : > { %v552_v28 = vand.u32 4294901760, %v551_v1  ;;  %v3373_v55 = vand.u32 4294901760, %v2724_v43  ;;  %547 = vmatprep.subr.mxu1 %v546_v27  ;;  %421 = vmatpush1.msra.mxu0 %v2667_v3  ;;  %v558_v40 = vand.u32 4294901760, %v557_v39  ;;  %v2754_v1 = vand.u32 4294901760, %v2726_v9 }
  0x91   : > { %3454 = vst [vmem:[#allocation31_spill] sm:$0xff] %v2734_v56  ;;  %v569_v63 = vsub.f32 %v2712_v59, %v3370_v20  ;;  %v2758_v8 = vsub.f32 %v2604_v38, %v2636_v51  ;;  %423 = vmatprep.subr.mxu0 %v2678_v14  ;;  %v564_v29 = vand.u32 4294901760, %v563_v50  ;;  %v3378_v39 = vand.u32 4294901760, %v2745_v58 }
  0x92   : > { %3455 = vst [vmem:[#allocation32_spill] sm:$0xff] %v2754_v1  ;;  %553 = vmatpush1.msra.mxu1 %v552_v28  ;;  %v575_v27 = vsub.f32 %v2724_v43, %v3373_v55  ;;  %v2768_v20 = vand.u32 4294901760, %v2736_v49  ;;  %425 = vmatpush1.msra.mxu0 %v2689_v48  ;;  %v2776_v50 = vsub.f32 %v2628_v47, %v2655_v61  ;;  %v2779_v30 = vand.u32 4294901760, %v2747_v45  ;;  %v2781_v55 = vld [vmem:[#allocation8 + $0x18] sm:$0xff] }
  0x93   : > { %559 = vmatprep.subr.mxu1 %v558_v40  ;;  %v570_v38 = vand.u32 4294901760, %v569_v63  ;;  %v3381_v28 = vand.u32 4294901760, %v2758_v8  ;;  %427 = vmatprep.subr.mxu0 %v2701_v54  ;;  %v581_v40 = vsub.f32 %v2745_v58, %v3378_v39  ;;  %v2789_v63 = vsub.f32 %v2638_v52, %v2667_v3  ;;  %v2806_v52 = vld [vmem:[#allocation8 + $0x10] sm:$0xff] }
  0x94   : > { %3456 = vst [vmem:[#allocation33_spill] sm:$0xff] %v2779_v30  ;;  %565 = vmatpush1.msra.mxu1 %v564_v29  ;;  %v576_v0 = vand.u32 4294901760, %v575_v27  ;;  %v2792_v47 = vand.u32 4294901760, %v2760_v35  ;;  %429 = vmatpush1.msra.mxu0 %v2715_v22  ;;  %v2801_v61 = vsub.f32 %v2645_v57, %v2678_v14  ;;  %v2804_v39 = vand.u32 4294901760, %v2770_v34  ;;  %v2817_v57 = vld [vmem:[#allocation8 + $0x8] sm:$0xff] }
  0x95   : > { %571 = vmatprep.subr.mxu1 %v570_v38  ;;  %v587_v29 = vsub.f32 %v2758_v8, %v3381_v28  ;;  %431 = vmatprep.subr.mxu0 %v2734_v56  ;;  %v582_v38 = vand.u32 4294901760, %v581_v40  ;;  %v2812_v28 = vsub.f32 %v2657_v62, %v2689_v48  ;;  %v2815_v27 = vand.u32 4294901760, %v2781_v55  ;;  %v2840_v40 = vld [vmem:[#allocation8] sm:$0xff] }
  0x96   : > { %3457 = vst [vmem:[#allocation34_spill] sm:$0xff] %v2792_v47  ;;  %3458 = vst [vmem:[#allocation35_spill] sm:$0xff] %v2804_v39  ;;  %577 = vmatpush1.msra.mxu1 %v576_v0  ;;  %433 = vmatpush1.msra.mxu0 %v2754_v1  ;;  %v3459_v51 = vand.u32 4294901760, %v2776_v50  ;;  %v2826_v3 = vsub.f32 %v2669_v7, %v2701_v54  ;;  %v3460_v62 = vand.u32 4294901760, %v2789_v63  ;;  %v2834_v42 = vand.u32 4294901760, %v2806_v52 }
  0x97   : > { %v588_v14 = vand.u32 4294901760, %v587_v29  ;;  %583 = vmatprep.subr.mxu1 %v582_v38  ;;  %435 = vmatprep.subr.mxu0 %v2768_v20  ;;  %v3462_v38 = vand.u32 4294901760, %v2801_v61  ;;  %v2848_v29 = vand.u32 4294901760, %v2817_v57  ;;  %v2866_v31 = vand.u32 4294901760, %v2840_v40 }
  0x98   : > { %v593_v0 = vsub.f32 %v2776_v50, %v3459_v51  ;;  %v599_v48 = vsub.f32 %v2789_v63, %v3460_v62  ;;  %3461 = vst [vmem:[#allocation36_spill] sm:$0xff] %v2834_v42  ;;  %v2838_v51 = vsub.f32 %v2680_v15, %v2715_v22  ;;  %437 = vmatpush1.msra.mxu0 %v2779_v30  ;;  %v3463_v15 = vand.u32 4294901760, %v2812_v28 }
  0x99   : > { %589 = vmatpush1.msra.mxu1 %v588_v14  ;;  %v605_v62 = vsub.f32 %v2801_v61, %v3462_v38  ;;  %439 = vmatprep.subr.mxu0 %v2792_v47  ;;  %v353_v38 = vld [vmem:[%s297_s20] sm:$0xff]  ;;  %s2204_s20 = scalar_lea.vmem %s2203_s16, 256 }
  0x9a   : > { %v594_v7 = vand.u32 4294901760, %v593_v0  ;;  %v600_v37 = vand.u32 4294901760, %v599_v48  ;;  %v611_v22 = vsub.f32 %v2812_v28, %v3463_v15  ;;  %v3402_v14 = vand.u32 4294901760, %v2838_v51  ;;  %441 = vmatpush1.msra.mxu0 %v2804_v39 }
  0x9b   : > { %v2857_v0 = vsub.f32 %v2703_v21, %v2734_v56  ;;  %v606_v54 = vand.u32 4294901760, %v605_v62  ;;  %v3464_v48 = vand.u32 4294901760, %v2826_v3  ;;  %v2870_v15 = vsub.f32 %v2726_v9, %v2754_v1  ;;  %443 = vmatprep.subr.mxu0 %v2815_v27 }
  0x9c   : > { %595 = vmatprep.subr.mxu1 %v594_v7  ;;  %v612_v21 = vand.u32 4294901760, %v611_v22  ;;  %v623_v7 = vsub.f32 %v2838_v51, %v3402_v14  ;;  %445 = vmatpush1.msra.mxu0 %v2834_v42  ;;  %v2887_v22 = vsub.f32 %v2747_v45, %v2779_v30 }
  0x9d   : > { %v617_v33 = vsub.f32 %v2826_v3, %v3464_v48  ;;  %601 = vmatpush1.msra.mxu1 %v600_v37  ;;  %v3403_v62 = vand.u32 4294901760, %v2857_v0  ;;  %v2879_v48 = vsub.f32 %v2736_v49, %v2768_v20  ;;  %v3406_v9 = vand.u32 4294901760, %v2870_v15  ;;  %447 = vmatprep.subr.mxu0 %v2848_v29 }
  0x9e   : > { %607 = vmatprep.subr.mxu1 %v606_v54  ;;  %v2883_v37 = vand.u32 4294901760, %v353_v38  ;;  %v624_v14 = vand.u32 4294901760, %v623_v7  ;;  %v2896_v54 = vsub.f32 %v2760_v35, %v2792_v47  ;;  %449 = vmatpush1.msra.mxu0 %v2866_v31 }
  0x9f   : > { %v618_v56 = vand.u32 4294901760, %v617_v33  ;;  %613 = vmatpush1.msra.mxu1 %v612_v21  ;;  %v629_v49 = vsub.f32 %v2857_v0, %v3403_v62  ;;  %v635_v45 = vsub.f32 %v2870_v15, %v3406_v9  ;;  %v2908_v62 = vsub.f32 %v2770_v34, %v2804_v39  ;;  %728 = vmatprep.subr.mxu0 %v2557_v19 }
  0xa0   : > { %3465 = vst [vmem:[#allocation37_spill] sm:$0xff] %v2883_v37  ;;  %v2903_v21 = vsub.f32 %v353_v38, %v2883_v37  ;;  %v3466_v35 = vand.u32 4294901760, %v2879_v48  ;;  %v3411_v47 = vand.u32 4294901760, %v2896_v54  ;;  %v2917_v38 = vsub.f32 %v2781_v55, %v2815_v27 }
  0xa1   : > { %619 = vmatprep.subr.mxu1 %v618_v56  ;;  %v630_v33 = vand.u32 4294901760, %v629_v49  ;;  %v636_v9 = vand.u32 4294901760, %v635_v45  ;;  %v3467_v34 = vand.u32 4294901760, %v2887_v22  ;;  %v3415_v49 = vand.u32 4294901760, %v2908_v62 }
  0xa2   : > { %625 = vmatpush1.msra.mxu1 %v624_v14  ;;  %v641_v56 = vsub.f32 %v2879_v48, %v3466_v35  ;;  %v3412_v7 = vand.u32 4294901760, %v2903_v21  ;;  %v653_v35 = vsub.f32 %v2896_v54, %v3411_v47  ;;  %v3419_v30 = vand.u32 4294901760, %v2917_v38 }
  0xa3   : > { %v647_v14 = vsub.f32 %v2887_v22, %v3467_v34  ;;  %631 = vmatprep.subr.mxu1 %v630_v33  ;;  %v2930_v55 = vsub.f32 %v2806_v52, %v2834_v42  ;;  %v659_v33 = vsub.f32 %v2908_v62, %v3415_v49 }
  0xa4   : > { %v642_v39 = vand.u32 4294901760, %v641_v56  ;;  %637 = vmatpush1.msra.mxu1 %v636_v9  ;;  %v486_v45 = vsub.f32 %v2903_v21, %v3412_v7  ;;  %v2940_v56 = vsub.f32 %v2817_v57, %v2848_v29  ;;  %v654_v47 = vand.u32 4294901760, %v653_v35 }
  0xa5   : > { %3468 = vst [vmem:[#allocation38_spill] sm:$0xff] %v2930_v55  ;;  %v648_v34 = vand.u32 4294901760, %v647_v14  ;;  %v665_v52 = vsub.f32 %v2917_v38, %v3419_v30  ;;  %v3418_v9 = vand.u32 4294901760, %v2930_v55  ;;  %v2948_v7 = vsub.f32 %v2840_v40, %v2866_v31 }
  0xa6   : > { %643 = vmatprep.subr.mxu1 %v642_v39  ;;  %v487_v14 = vand.u32 4294901760, %v486_v45  ;;  %v660_v42 = vand.u32 4294901760, %v659_v33  ;;  %v3417_v49 = vand.u32 4294901760, %v2940_v56  ;;  %v3470_v33 = vmov 0.0  }
  0xa7   : > { %3469 = vst [vmem:[#allocation39_spill] sm:$0xff] %v2948_v7  ;;  %649 = vmatpush1.msra.mxu1 %v648_v34  ;;  %v666_v57 = vand.u32 4294901760, %v665_v52  ;;  %v671_v39 = vsub.f32 %v2930_v55, %v3418_v9  ;;  %v3416_v35 = vand.u32 4294901760, %v2948_v7  ;;  %v3471_v52 = vld [vmem:[#allocation20_spill] sm:$0xff]  ;;  %v3482_v9 = vld [vmem:[#allocation31_spill] sm:$0xff]  ;;  %v3483_v30 = vand.u32 4294901760, %v2557_v19 }
  0xa8   : > { %655 = vmatprep.subr.mxu1 %v654_v47  ;;  %488 = vmatmul.mubr.f32.vlgmr.msra.gmra.mxu0 %v487_v14  ;;  %v677_v40 = vsub.f32 %v2940_v56, %v3417_v49  ;;  %v3472_v14 = vld [vmem:[#allocation21_spill] sm:$0xff]  ;;  %v3481_v49 = vld [vmem:[#allocation30_spill] sm:$0xff]  ;;  %v3490_v19 = vand.u32 4294901760, %v2599_v36 }
  0xa9   : > { %661 = vmatpush1.msra.mxu1 %v660_v42  ;;  %731 = vmatpush1.msra.mxu0 %v2570_v24  ;;  %v672_v45 = vand.u32 4294901760, %v671_v39  ;;  %v683_v47 = vsub.f32 %v2948_v7, %v3416_v35  ;;  %v3474_v39 = vld [vmem:[#allocation23_spill] sm:$0xff]  ;;  %v3480_v35 = vld [vmem:[#allocation29_spill] sm:$0xff] }
  0xaa   : > { %667 = vmatprep.subr.mxu1 %v666_v57  ;;  %734 = vmatprep.subr.mxu0 %v2576_v26  ;;  %v678_v34 = vand.u32 4294901760, %v677_v40  ;;  %v3473_v57 = vld [vmem:[#allocation22_spill] sm:$0xff]  ;;  %v3475_v40 = vld [vmem:[#allocation24_spill] sm:$0xff] }
  0xab   : > { %854 = vmatprep.mubr.f32.mxu0 %v3470_v33  ;;  %737 = vmatpush1.msra.mxu0 %v2590_v32  ;;  %v684_v42 = vand.u32 4294901760, %v683_v47  ;;  %v3477_v47 = vld [vmem:[#allocation26_spill] sm:$0xff] }
  0xac   : > { %673 = vmatpush1.msra.mxu1 %v672_v45  ;;  %740 = vmatprep.subr.mxu0 %v2599_v36  ;;  %v3476_v45 = vld [vmem:[#allocation25_spill] sm:$0xff]  ;;  %v3495_v36 = vand.u32 4294901760, %v2903_v21 }
  0xad   : > { %679 = vmatprep.subr.mxu1 %v678_v34  ;;  %743 = vmatpush1.msra.mxu0 %v2612_v41  ;;  %v3478_v34 = vld [vmem:[#allocation27_spill] sm:$0xff] }
  0xae   : > { %685 = vmatpush1.msra.mxu1 %v684_v42  ;;  %746 = vmatprep.subr.mxu0 %v2626_v46  ;;  %v3479_v42 = vld [vmem:[#allocation28_spill] sm:$0xff] }
  0xaf   : > { %720 = vmatmul.mubr.f32.vlgmr.msra.gmra.mxu1 %v2883_v37  ;;  %749 = vmatpush1.msra.mxu0 %v2652_v60  ;;  %v3484_v37 = vld [vmem:[#allocation33_spill] sm:$0xff] }
  0xb0   : > { %864 = vmatprep.subr.mxu1 %v2537_v4  ;;  %752 = vmatprep.subr.mxu0 %v2664_v2 }
  0xb1   : > { %866 = vmatpush1.msra.mxu1 %v2539_v5  ;;  %755 = vmatpush1.msra.mxu0 %v2675_v13 }
  0xb2   : > { %868 = vmatprep.subr.mxu1 %v2541_v6  ;;  %758 = vmatprep.subr.mxu0 %v2686_v44 }
  0xb3   : > { %870 = vmatpush1.msra.mxu1 %v2543_v10  ;;  %761 = vmatpush1.msra.mxu0 %v2698_v53 }
  0xb4   : > { %872 = vmatprep.subr.mxu1 %v2545_v11  ;;  %764 = vmatprep.subr.mxu0 %v2712_v59 }
  0xb5   : > { %874 = vmatpush1.msra.mxu1 %v2547_v12  ;;  %767 = vmatpush1.msra.mxu0 %v2724_v43 }
  0xb6   : > { %876 = vmatprep.subr.mxu1 %v2550_v16  ;;  %770 = vmatprep.subr.mxu0 %v2745_v58 }
  0xb7   : > { %878 = vmatpush1.msra.mxu1 %v2552_v17  ;;  %773 = vmatpush1.msra.mxu0 %v2758_v8 }
  0xb8   : > { %880 = vmatprep.subr.mxu1 %v2554_v18  ;;  %776 = vmatprep.subr.mxu0 %v2776_v50 }
  0xb9   : > { %882 = vmatpush1.msra.mxu1 %v2567_v23  ;;  %779 = vmatpush1.msra.mxu0 %v2789_v63 }
  0xba   : > { %884 = vmatprep.subr.mxu1 %v2573_v25  ;;  %782 = vmatprep.subr.mxu0 %v2801_v61 }
  0xbb   : > { %886 = vmatpush1.msra.mxu1 %v3471_v52  ;;  %785 = vmatpush1.msra.mxu0 %v2812_v28 }
  0xbc   : > { %888 = vmatprep.subr.mxu1 %v3472_v14  ;;  %788 = vmatprep.subr.mxu0 %v2826_v3 }
  0xbd   : > { %890 = vmatpush1.msra.mxu1 %v3473_v57  ;;  %791 = vmatpush1.msra.mxu0 %v2838_v51 }
  0xbe   : > { %892 = vmatprep.subr.mxu1 %v3474_v39  ;;  %794 = vmatprep.subr.mxu0 %v2857_v0 }
  0xbf   : > { %894 = vmatpush1.msra.mxu1 %v3475_v40  ;;  %797 = vmatpush1.msra.mxu0 %v2870_v15 }
  0xc0   : > { %896 = vmatprep.subr.mxu1 %v3476_v45  ;;  %800 = vmatprep.subr.mxu0 %v2879_v48 }
  0xc1   : > { %898 = vmatpush1.msra.mxu1 %v3477_v47  ;;  %803 = vmatpush1.msra.mxu0 %v2887_v22 }
  0xc2   : > { %900 = vmatprep.subr.mxu1 %v3478_v34  ;;  %806 = vmatprep.subr.mxu0 %v2896_v54 }
  0xc3   : > { %902 = vmatpush1.msra.mxu1 %v3479_v42  ;;  %809 = vmatpush1.msra.mxu0 %v2908_v62 }
  0xc4   : > { %904 = vmatprep.subr.mxu1 %v3480_v35  ;;  %812 = vmatprep.subr.mxu0 %v2917_v38 }
  0xc5   : > { %906 = vmatpush1.msra.mxu1 %v3481_v49  ;;  %815 = vmatpush1.msra.mxu0 %v2930_v55  ;;  %v3485_v49 = vand.u32 4294901760, %v2570_v24  ;;  %v3486_v55 = vld [vmem:[#allocation34_spill] sm:$0xff]  ;;  %v3492_v24 = vand.u32 4294901760, %v2612_v41  ;;  %v3497_v41 = vand.u32 4294901760, %v2675_v13  ;;  %v3504_v13 = vand.u32 4294901760, %v2776_v50  ;;  %v348_v50 = vld [vmem:[#allocation7 + $0x18] sm:$0xff] }
  0xc6   : > { %908 = vmatprep.subr.mxu1 %v3482_v9  ;;  %818 = vmatprep.subr.mxu0 %v2940_v56  ;;  %v3487_v9 = vand.u32 4294901760, %v2576_v26  ;;  %v3493_v26 = vand.u32 4294901760, %v2626_v46  ;;  %v3498_v46 = vand.u32 4294901760, %v2686_v44  ;;  %v3507_v44 = vand.u32 4294901760, %v2812_v28 }
  0xc7   : > { %910 = vmatpush1.msra.mxu1 %v2754_v1  ;;  %821 = vmatpush1.msra.mxu0 %v2948_v7  ;;  %v3488_v1 = vld [vmem:[#allocation35_spill] sm:$0xff]  ;;  %v3489_v7 = vand.u32 4294901760, %v2590_v32  ;;  %v3494_v32 = vand.u32 4294901760, %v2652_v60  ;;  %v3499_v60 = vand.u32 4294901760, %v2698_v53 }
  0xc8   : > { %912 = vmatprep.subr.mxu1 %v2768_v20  ;;  %857 = vmatmul.mubr.f32.vlgmr.msra.gmra.mxu0 %v2903_v21  ;;  %v347_v21 = vld [vmem:[#allocation7 + $0x10] sm:$0xff] }
  0xc9   : > { %972 = vmatprep.subr.mxu0 %v3483_v30  ;;  %914 = vmatpush1.msra.mxu1 %v3484_v37  ;;  %v3491_v30 = vld [vmem:[#allocation36_spill] sm:$0xff] }
  0xca   : > { %976 = vmatpush1.msra.mxu0 %v3485_v49  ;;  %916 = vmatprep.subr.mxu1 %v3486_v55  ;;  %v3513_v49 = vand.u32 4294901760, %v2887_v22 }
  0xcb   : > { %980 = vmatprep.subr.mxu0 %v3487_v9  ;;  %918 = vmatpush1.msra.mxu1 %v3488_v1  ;;  %v346_v9 = vld [vmem:[#allocation7 + $0x8] sm:$0xff] }
  0xcc   : > { %984 = vmatpush1.msra.mxu0 %v3489_v7  ;;  %920 = vmatprep.subr.mxu1 %v2815_v27  ;;  %v3496_v7 = vand.u32 4294901760, %v2664_v2  ;;  %v3500_v2 = vand.u32 4294901760, %v2712_v59  ;;  %v3510_v59 = vand.u32 4294901760, %v2857_v0 }
  0xcd   : > { %988 = vmatprep.subr.mxu0 %v3490_v19  ;;  %922 = vmatpush1.msra.mxu1 %v3491_v30  ;;  %v3519_v19 = vld [vmem:[#allocation30_spill] sm:$0xff] }
  0xce   : > { %992 = vmatpush1.msra.mxu0 %v3492_v24  ;;  %924 = vmatprep.subr.mxu1 %v2848_v29 }
  0xcf   : > { %996 = vmatprep.subr.mxu0 %v3493_v26  ;;  %926 = vmatpush1.msra.mxu1 %v2866_v31 }
  0xd0   : > { %959 = vmatprep.mubr.f32.mxu1 %v3470_v33  ;;  %1000 = vmatpush1.msra.mxu0 %v3494_v32 }
  0xd1   : > { %963 = vmatmul.mubr.f32.vlgmr.msra.gmra.mxu1 %v3495_v36  ;;  %1004 = vmatprep.subr.mxu0 %v3496_v7  ;;  %v3522_v7 = vld [vmem:[#allocation39_spill] sm:$0xff] }
  0xd2   : > { %1138 = vmatprep.subr.mxu1 %v2537_v4  ;;  %1008 = vmatpush1.msra.mxu0 %v3497_v41  ;;  %v3501_v4 = vand.u32 4294901760, %v2724_v43  ;;  %v3506_v43 = vand.u32 4294901760, %v2801_v61  ;;  %v3523_v41 = vand.u32 4294901760, %v3522_v7 }
  0xd3   : > { %1140 = vmatpush1.msra.mxu1 %v2539_v5  ;;  %1012 = vmatprep.subr.mxu0 %v3498_v46  ;;  %v3502_v5 = vand.u32 4294901760, %v2745_v58  ;;  %v3509_v58 = vand.u32 4294901760, %v2838_v51  ;;  %v3512_v51 = vand.u32 4294901760, %v2879_v48  ;;  %v3118_v48 = vand.u32 4294901760, %v348_v50 }
  0xd4   : > { %1142 = vmatprep.subr.mxu1 %v2541_v6  ;;  %1016 = vmatpush1.msra.mxu0 %v3499_v60  ;;  %v3503_v6 = vand.u32 4294901760, %v2758_v8  ;;  %v349_v8 = vld [vmem:[#allocation7 + $0x20] sm:$0xff] }
  0xd5   : > { %1144 = vmatpush1.msra.mxu1 %v2543_v10  ;;  %1020 = vmatprep.subr.mxu0 %v3500_v2  ;;  %v352_v10 = vld [vmem:[#allocation7 + $0x38] sm:$0xf]  ;;  %v3152_v36 = vsub.f32 %v348_v50, %v3118_v48 }
  0xd6   : > { %1146 = vmatprep.subr.mxu1 %v2545_v11  ;;  %1024 = vmatpush1.msra.mxu0 %v3501_v4  ;;  %v3505_v11 = vand.u32 4294901760, %v2789_v63  ;;  %v3524_v4 = vld [vmem:[#allocation32_spill] sm:$0xff] }
  0xd7   : > { %1148 = vmatpush1.msra.mxu1 %v2547_v12  ;;  %1028 = vmatprep.subr.mxu0 %v3502_v5  ;;  %v351_v12 = vld [vmem:[#allocation7 + $0x30] sm:$0xf] }
  0xd8   : > { %1150 = vmatprep.subr.mxu1 %v2550_v16  ;;  %1032 = vmatpush1.msra.mxu0 %v3503_v6  ;;  %v344_v16 = vld [vmem:[%s288_s17] sm:$0xff]  ;;  %s2198_s17 = scalar_lea.vmem %s3280_s2, 128 }
  0xd9   : > { %1152 = vmatpush1.msra.mxu1 %v2552_v17  ;;  %1036 = vmatprep.subr.mxu0 %v3504_v13  ;;  %v1250_v17 = vsel %vm1245_vm0, %v352_v10, 0  ;;  %v1243_v53 = vsel %vm1241_vm1, %v344_v16, 0  ;;  %p2199_p12 = scmp.ne.s32.totalorder %s3280_s2, %s2198_s17  ;;  %p2206_p1 = scmp.lt.s32.totalorder %s2204_s20, %s2198_s17 }
  0xda   : > { %1154 = vmatprep.subr.mxu1 %v2554_v18  ;;  %1040 = vmatpush1.msra.mxu0 %v3505_v11  ;;  %v3508_v18 = vand.u32 4294901760, %v2826_v3  ;;  %v3090_v61 = vand.u32 4294901760, %v1250_v17  ;;  %v3511_v3 = vand.u32 4294901760, %v2870_v15  ;;  %v3100_v63 = vand.u32 4294901760, %v1243_v53 }
  0xdb   : > { %1156 = vmatpush1.msra.mxu1 %v2567_v23  ;;  %1044 = vmatprep.subr.mxu0 %v3506_v43  ;;  %v1247_v23 = vsel %vm1245_vm0, %v351_v12, 0  ;;  %v3110_v15 = vand.u32 4294901760, %v349_v8  ;;  %v1386_v12 = vand.u32 4294901760, %v3152_v36  ;;  %p2200_p9 = pnand %p2199_p12, %p3526_p7  ;;  %p2207_p3 = por %p2206_p1, %p2205_p5 }
  0xdc   : > { %1158 = vmatprep.subr.mxu1 %v2573_v25  ;;  %1048 = vmatpush1.msra.mxu0 %v3507_v44  ;;  %v350_v25 = vld [vmem:[#allocation7 + $0x28] sm:$0xff]  ;;  %v3098_v28 = vand.u32 4294901760, %v1247_v23 }
  0xdd   : > { %1160 = vmatpush1.msra.mxu1 %v3471_v52  ;;  %1052 = vmatprep.subr.mxu0 %v3508_v18  ;;  %v3105_v0 = vand.u32 4294901760, %v350_v25  ;;  %v3113_v52 = vsub.f32 %v1250_v17, %v3090_v61  ;;  %v3143_v24 = vsub.f32 %v349_v8, %v3110_v15  ;;  %p2201_p13 = pneg %p2200_p9 }
  0xde   : > { %1162 = vmatprep.subr.mxu1 %v3472_v14  ;;  %1056 = vmatpush1.msra.mxu0 %v3509_v58  ;;  %v3514_v14 = vand.u32 4294901760, %v2896_v54  ;;  %v3124_v22 = vsub.f32 %v1247_v23, %v3098_v28  ;;  %v3516_v54 = vand.u32 4294901760, %v2917_v38  ;;  %v3520_v38 = vand.u32 4294901760, %v2940_v56  ;;  %v3525_v56 = vld [vmem:[#allocation37_spill] sm:$0xff] }
  0xdf   : > { %1164 = vmatpush1.msra.mxu1 %v3473_v57  ;;  %1060 = vmatprep.subr.mxu0 %v3510_v59  ;;  %v345_v57 = vld [vmem:[#allocation7] sm:$0xff]  ;;  %v1362_v26 = vand.u32 4294901760, %v3113_v52  ;;  %v1380_v11 = vand.u32 4294901760, %v3143_v24  ;;  %p2208_p4 = pnand %p2207_p3, %p2201_p13 }
  0xe0   : > { %1166 = vmatprep.subr.mxu1 %v3474_v39  ;;  %1064 = vmatpush1.msra.mxu0 %v3511_v3  ;;  %v3515_v39 = vand.u32 4294901760, %v2908_v62  ;;  %v3137_v62 = vsub.f32 %v350_v25, %v3105_v0  ;;  %v3146_v32 = vand.u32 4294901760, %v345_v57  ;;  %v1368_v60 = vand.u32 4294901760, %v3124_v22 }
  0xe1   : > { %1168 = vmatpush1.msra.mxu1 %v3475_v40  ;;  %1068 = vmatprep.subr.mxu0 %v3512_v51  ;;  %v3126_v40 = vand.u32 4294901760, %v347_v21  ;;  %v1363_v10 = vsub.f32 %v3113_v52, %v1362_v26  ;;  %v1381_v44 = vsub.f32 %v3143_v24, %v1380_v11 }
  0xe2   : > { %1170 = vmatprep.subr.mxu1 %v3476_v45  ;;  %1072 = vmatpush1.msra.mxu0 %v3513_v49  ;;  %v3129_v45 = vsub.f32 %v1243_v53, %v3100_v63  ;;  %v1374_v5 = vand.u32 4294901760, %v3137_v62  ;;  %v3174_v13 = vsub.f32 %v345_v57, %v3146_v32 }
  0xe3   : > { %1172 = vmatpush1.msra.mxu1 %v3477_v47  ;;  %1076 = vmatprep.subr.mxu0 %v3514_v14  ;;  %v3134_v47 = vand.u32 4294901760, %v346_v9  ;;  %v3158_v46 = vsub.f32 %v347_v21, %v3126_v40  ;;  %v1364_v17 = vand.u32 4294901760, %v1363_v10 }
  0xe4   : > { %1174 = vmatprep.subr.mxu1 %v3478_v34  ;;  %1080 = vmatpush1.msra.mxu0 %v3515_v39  ;;  %v3517_v34 = vld [vmem:[#allocation38_spill] sm:$0xff]  ;;  %v1327_v2 = vand.u32 4294901760, %v3129_v45  ;;  %v1404_v18 = vand.u32 4294901760, %v3174_v13 }
  0xe5   : > { %1176 = vmatpush1.msra.mxu1 %v3479_v42  ;;  %1084 = vmatprep.subr.mxu0 %v3516_v54  ;;  %v3518_v42 = vand.u32 4294901760, %v3517_v34  ;;  %v3166_v6 = vsub.f32 %v346_v9, %v3134_v47  ;;  %v1392_v43 = vand.u32 4294901760, %v3158_v46 }
  0xe6   : > { %1178 = vmatprep.subr.mxu1 %v3480_v35  ;;  %v3521_v35 = vld [vmem:[#allocation31_spill] sm:$0xff]  ;;  %1129 = vmatprep.mubr.f32.mxu0 %v3470_v33  ;;  %v1328_v16 = vsub.f32 %v3129_v45, %v1327_v2  ;;  %v1405_v25 = vsub.f32 %v3174_v13, %v1404_v18 }
  0xe7   : > { %1088 = vmatpush1.msra.mxu0 %v3518_v42  ;;  %1180 = vmatpush1.msra.mxu1 %v3519_v19  ;;  %v1393_v53 = vsub.f32 %v3158_v46, %v1392_v43 }
  0xe8   : > { %1092 = vmatprep.subr.mxu0 %v3520_v38  ;;  %1182 = vmatprep.subr.mxu1 %v3521_v35  ;;  %v1329_v23 = vand.u32 4294901760, %v1328_v16  ;;  %v1406_v3 = vand.u32 4294901760, %v1405_v25 }
  0xe9   : > { %1096 = vmatpush1.msra.mxu0 %v3523_v41  ;;  %1184 = vmatpush1.msra.mxu1 %v3524_v4 }
  0xea   : > { %1131 = vmatmul.mubr.f32.vlgmr.msra.gmra.mxu0 %v3525_v56  ;;  %1186 = vmatprep.subr.mxu1 %v2768_v20  ;;  %v1369_v20 = vsub.f32 %v3124_v22, %v1368_v60 }
  0xeb   : > { %1277 = vmatprep.subr.mxu0 %v3090_v61  ;;  %1188 = vmatpush1.msra.mxu1 %v3484_v37  ;;  %v1375_v37 = vsub.f32 %v3137_v62, %v1374_v5 }
  0xec   : > { %1279 = vmatpush1.msra.mxu0 %v3098_v28  ;;  %1190 = vmatprep.subr.mxu1 %v3486_v55  ;;  %v1398_v55 = vand.u32 4294901760, %v3166_v6 }
  0xed   : > { %1281 = vmatprep.subr.mxu0 %v3105_v0  ;;  %1192 = vmatpush1.msra.mxu1 %v3488_v1  ;;  %v1387_v1 = vsub.f32 %v3152_v36, %v1386_v12 }
  0xee   : > { %1283 = vmatpush1.msra.mxu0 %v3110_v15  ;;  %1194 = vmatprep.subr.mxu1 %v2815_v27  ;;  %v1370_v27 = vand.u32 4294901760, %v1369_v20  ;;  %v1399_v58 = vsub.f32 %v3166_v6, %v1398_v55 }
  0xef   : > { %1285 = vmatprep.subr.mxu0 %v3118_v48  ;;  %1196 = vmatpush1.msra.mxu1 %v3491_v30  ;;  %v1376_v30 = vand.u32 4294901760, %v1375_v37  ;;  %v1388_v59 = vand.u32 4294901760, %v1387_v1 }
  0xf0   : > { %1233 = vmatprep.mubr.f32.mxu1 %v3470_v33  ;;  %1198 = vmatprep.subr.mxu1 %v2848_v29  ;;  %v1382_v29 = vand.u32 4294901760, %v1381_v44  ;;  %v1400_v8 = vand.u32 4294901760, %v1399_v58 }
  0xf1   : > { %1287 = vmatpush1.msra.mxu0 %v3126_v40  ;;  %1200 = vmatpush1.msra.mxu1 %v2866_v31  ;;  %v1394_v31 = vand.u32 4294901760, %v1393_v53 }
  0xf2   : > { %1289 = vmatprep.subr.mxu0 %v3134_v47  ;;  %1235 = vmatmul.mubr.f32.vlgmr.msra.gmra.mxu1 %v3525_v56 }
  0xf3   : > { %1365 = vmatprep.subr.mxu1 %v1364_v17  ;;  %1291 = vmatpush1.msra.mxu0 %v3146_v32 }
  0xf4   : > { %1324 = vmatprep.mubr.f32.mxu0 %v3470_v33  ;;  %1371 = vmatpush1.msra.mxu1 %v1370_v27 }
  0xf5   : > { %1330 = vmatmul.mubr.f32.vlgmr.msra.gmra.mxu0 %v1329_v23  ;;  %1377 = vmatprep.subr.mxu1 %v1376_v30 }
  0xf6   : > { %1474 = vmatprep.subr.mxu0 %v3113_v52  ;;  %1383 = vmatpush1.msra.mxu1 %v1382_v29 }
  0xf7   : > { %1477 = vmatpush1.msra.mxu0 %v3124_v22  ;;  %1389 = vmatprep.subr.mxu1 %v1388_v59 }
  0xf8   : > { %1480 = vmatprep.subr.mxu0 %v3137_v62  ;;  %1395 = vmatpush1.msra.mxu1 %v1394_v31 }
  0xf9   : > { %1483 = vmatpush1.msra.mxu0 %v3143_v24  ;;  %1401 = vmatprep.subr.mxu1 %v1400_v8 }
  0xfa   : > { %1486 = vmatprep.subr.mxu0 %v3152_v36  ;;  %1407 = vmatpush1.msra.mxu1 %v1406_v3 }
  0xfb   : > { %1440 = vmatprep.mubr.f32.mxu1 %v3470_v33  ;;  %1489 = vmatpush1.msra.mxu0 %v3158_v46 }
  0xfc   : > { %1442 = vmatmul.mubr.f32.vlgmr.msra.gmra.mxu1 %v3100_v63  ;;  %1492 = vmatprep.subr.mxu0 %v3166_v6 }
  0xfd   : > { %1562 = vmatprep.subr.mxu1 %v3090_v61  ;;  %1495 = vmatpush1.msra.mxu0 %v3174_v13  ;;  %v1795_v13 = vld [vmem:[%s3353_s4] sm:$0x3] }
  0xfe   : > { %1528 = vmatprep.mubr.f32.mxu0 %v3470_v33  ;;  %1564 = vmatpush1.msra.mxu1 %v3098_v28 }
  0xff   : > { %1531 = vmatmul.mubr.f32.vlgmr.msra.gmra.mxu0 %v3129_v45  ;;  %1566 = vmatprep.subr.mxu1 %v3105_v0 }
 0x100   : > { %1646 = vmatprep.subr.mxu0 %v1362_v26  ;;  %1568 = vmatpush1.msra.mxu1 %v3110_v15  ;;  %v1797_v26 = vlaneseq }
 0x101   : > { %1650 = vmatpush1.msra.mxu0 %v1368_v60  ;;  %1570 = vmatprep.subr.mxu1 %v3118_v48 }
 0x102   : > { %1654 = vmatprep.subr.mxu0 %v1374_v5  ;;  %1572 = vmatpush1.msra.mxu1 %v3126_v40  ;;  %v1798_v46 = vshrl.u32 %v1797_v26, 7 }
 0x103   : > { %1658 = vmatpush1.msra.mxu0 %v1380_v11  ;;  %1574 = vmatprep.subr.mxu1 %v3134_v47 }
 0x104   : > { %1662 = vmatprep.subr.mxu0 %v1386_v12  ;;  %1576 = vmatpush1.msra.mxu1 %v3146_v32  ;;  %v1799_v10 = vsub.s32 0, %v1798_v46  ;;  %v1803_v12 = vsub.s32 1, %v1798_v46 }
 0x105   : > { %1609 = vmatprep.mubr.f32.mxu1 %v3470_v33  ;;  %1666 = vmatpush1.msra.mxu0 %v1392_v43 }
 0x106   : > { %1613 = vmatmul.mubr.f32.vlgmr.msra.gmra.mxu1 %v1327_v2  ;;  %1670 = vmatprep.subr.mxu0 %v1398_v55  ;;  %v1800_v43 = vrot.slane %v1795_v13, %v1799_v10  ;;  %v1804_v44 = vrot.slane %v1795_v13, %v1803_v12 }
 0x107   : > { %1740 = vmatprep.subr.mxu1 %v3090_v61  ;;  %1674 = vmatpush1.msra.mxu0 %v1404_v18 }
 0x108   : > { %1707 = vmatprep.mubr.f32.mxu0 %v3470_v33  ;;  %1742 = vmatpush1.msra.mxu1 %v3098_v28 }
 0x109   : > { %1709 = vmatmul.mubr.f32.vlgmr.msra.gmra.mxu0 %v3100_v63  ;;  %1744 = vmatprep.subr.mxu1 %v3105_v0 }
 0x10a   : > { %1787 = vmatprep.mubr.f32.mxu1 %v3470_v33  ;;  %1746 = vmatpush1.msra.mxu1 %v3110_v15 }
 0x10b   : > { %1748 = vmatprep.subr.mxu1 %v3118_v48 }
 0x10c   : > { %1750 = vmatpush1.msra.mxu1 %v3126_v40 }
 0x10d   : > { %1752 = vmatprep.subr.mxu1 %v3134_v47 }
 0x10e   : > { %1754 = vmatpush1.msra.mxu1 %v3146_v32 }
 0x10f   : > { %1789 = vmatmul.mubr.f32.vlgmr.msra.gmra.mxu1 %v3100_v63 }
 0x168   : > { %v489_v61 = vpop.f32.mrf.mxu0 }
 0x16a   : > { %v491_v50 = vpop.f32.mrf.mxu0 }
 0x16f   : > { %v721_v28 = vpop.f32.mrf.mxu1 }
 0x170   : > { %v722_v33 = vadd.f32 %v721_v28, %v489_v61 }
 0x171   : > { %v723_v51 = vpop.f32.mrf.mxu1 }
 0x172   : > { %v724_v52 = vadd.f32 %v723_v51, %v491_v50 }
 0x188   : > { %v858_v21 = vpop.f32.mrf.mxu0 }
 0x189   : > { %v859_v14 = vadd.f32 %v858_v21, %v722_v33 }
 0x18a   : > { %v860_v49 = vpop.f32.mrf.mxu0 }
 0x18b   : > { %v861_v57 = vadd.f32 %v860_v49, %v724_v52 }
 0x191   : > { %v964_v0 = vpop.f32.mrf.mxu1 }
 0x192   : > { %v965_v39 = vadd.f32 %v964_v0, %v859_v14 }
 0x193   : > { %v966_v9 = vpop.f32.mrf.mxu1 }
 0x194   : > { %v967_v40 = vadd.f32 %v966_v9, %v861_v57 }
 0x1aa   : > { %v1132_v15 = vpop.f32.mrf.mxu0 }
 0x1ab   : > { %v1133_v45 = vadd.f32 %v1132_v15, %v965_v39 }
 0x1ac   : > { %v1134_v22 = vpop.f32.mrf.mxu0 }
 0x1ad   : > { %v1135_v47 = vadd.f32 %v1134_v22, %v967_v40 }
 0x1b2   : > { %v1236_v48 = vpop.f32.mrf.mxu1 }
 0x1b3   : > { %v1237_v62 = vadd.f32 %v1236_v48, %v1133_v45 }
 0x1b4   : > { %v1238_v54 = vpop.f32.mrf.mxu1 }
 0x1b5   : > { %v1331_v63 = vpop.f32.mrf.mxu0  ;;  %v1239_v42 = vadd.f32 %v1238_v54, %v1135_v47 }
 0x1b6   : > { %v1332_v24 = vadd.f32 %v1331_v63, %v1237_v62 }
 0x1b7   : > { %v1333_v19 = vpop.f32.mrf.mxu0 }
 0x1b8   : > { %v1334_v35 = vadd.f32 %v1333_v19, %v1239_v42 }
 0x1bc   : > { %v1443_v34 = vpop.f32.mrf.mxu1 }
 0x1bd   : > { %v1444_v36 = vadd.f32 %v1443_v34, %v1332_v24 }
 0x1be   : > { %v1445_v32 = vpop.f32.mrf.mxu1 }
 0x1bf   : > { %v1532_v38 = vpop.f32.mrf.mxu0  ;;  %v1446_v41 = vadd.f32 %v1445_v32, %v1334_v35 }
 0x1c0   : > { %v1533_v2 = vadd.f32 %v1532_v38, %v1444_v36 }
 0x1c1   : > { %v1534_v60 = vpop.f32.mrf.mxu0 }
 0x1c2   : > { %v1535_v5 = vadd.f32 %v1534_v60, %v1446_v41 }
 0x1c6   : > { %v1614_v7 = vpop.f32.mrf.mxu1 }
 0x1c7   : > { %v1615_v6 = vadd.f32 %v1614_v7, %v1533_v2 }
 0x1c8   : > { %v1616_v4 = vpop.f32.mrf.mxu1 }
 0x1c9   : > { %v1710_v56 = vpop.f32.mrf.mxu0  ;;  %v1617_v11 = vadd.f32 %v1616_v4, %v1535_v5 }
 0x1ca   : > { %v1711_v16 = vadd.f32 %v1710_v56, %v1615_v6 }
 0x1cb   : > { %v1712_v20 = vpop.f32.mrf.mxu0 }
 0x1cc   : > { %v1713_v55 = vadd.f32 %v1712_v20, %v1617_v11 }
 0x1cf   : > { %v1790_v37 = vpop.f32.mrf.mxu1 }
 0x1d0   : > { %v1791_v17 = vadd.f32 %v1790_v37, %v1711_v16 }
 0x1d1   : > { %v1792_v18 = vpop.f32.mrf.mxu1 }
 0x1d2   : > { %v1807_v1 = vadd.f32 %v1800_v43, %v1791_v17  ;;  %v1793_v27 = vadd.f32 %v1792_v18, %v1713_v55 }
 0x1d4   : > { %v1809_v23 = vmax.f32 %v1807_v1, 0.0  ;;  %v1808_v53 = vadd.f32 %v1804_v44, %v1793_v27 }
 0x1d6   : > { %1810 = vst [vmem:[%s336_s8] sm:$0xff] %v1809_v23  ;;  %1811 = vst [vmem:[%s343_s10] sm:$0xff] %v1808_v53 }
 0x1d7   : > { %2211 = shalt.err (!%p2208_p4)
}
 0x1d8   : > { %s2212_s27 = scalar_lea.hbm %s3278_s15, 128  ;;  %s2216_s8 = scalar_lea.hbm %s3354_s5, 256 }
 0x1d9   : > { %p2213_p10 = scmp.ne.s32.totalorder %s3278_s15, %s2212_s27  ;;  %p2217_p11 = scmp.lt.s32.totalorder %s3278_s15, %s3354_s5 }
 0x1da   : > { %p2218_p2 = scmp.lt.s32.totalorder %s2216_s8, %s2212_s27 }
 0x1db   : > { %p2214_p0 = pnand %p2213_p10, %p3526_p7 }
 0x1dc   : > { %p2219_p6 = por %p2218_p2, %p2217_p11 }
 0x1dd   : > { %p2215_p8 = pneg %p2214_p0 }
 0x1df   : > { %p2220_p12 = pnand %p2219_p6, %p2215_p8 }
 0x1e1   : > { %2223 = shalt.err (!%p2220_p12)
}
 0x1e2   : > { %2022 = dma.vmem_to_hbm [thread:$0]  (%p3526_p7), %s3280_s2, 128, %s3278_s15, %s1813_s3  }
 0x1e3   : > { %s1818_s13 = scalar_lea.sflag [#allocation12], %s2510_s11  ;;  %s2224_s26 = scalar_lea.vmem %s3287_s18, 128 }
 0x1e4   : > { %p2225_p9 = scmp.ne.s32.totalorder %s3287_s18, %s2224_s26  ;;  %s2314_s25 = smov [#allocation11]  }
 0x1e5   : > { %s2228_s17 = sshll.u32 %s2314_s25, 4  ;;  %s2229_s17 = int_to_ptr.vmem [resolvable:$false] %s2228_s17 }
 0x1e6   : > { %p2226_p13 = pnand %p2225_p9, %p3526_p7  ;;  %s2230_s29 = scalar_lea.vmem %s2229_s17, 256 }
 0x1e7   : > { %p2231_p1 = scmp.lt.s32.totalorder %s3287_s18, %s2229_s17  ;;  %p2232_p3 = scmp.lt.s32.totalorder %s2230_s29, %s2224_s26 }
 0x1e8   : > { %p2227_p5 = pneg %p2226_p13 }
 0x1e9   : > { %p2233_p4 = por %p2232_p3, %p2231_p1 }
 0x1eb   : > { %p2234_p10 = pnand %p2233_p4, %p2227_p5 }
 0x1ed   : > { %2237 = shalt.err (!%p2234_p10)
}
 0x1ee   : > { %s2238_s2 = scalar_lea.hbm %s3285_s14, 128  ;;  %s2242_s3 = scalar_lea.hbm %s3355_s6, 256 }
 0x1ef   : > { %p2239_p0 = scmp.ne.s32.totalorder %s3285_s14, %s2238_s2  ;;  %p2243_p2 = scmp.lt.s32.totalorder %s3285_s14, %s3355_s6 }
 0x1f0   : > { %p2244_p6 = scmp.lt.s32.totalorder %s2242_s3, %s2238_s2 }
 0x1f1   : > { %p2240_p8 = pnand %p2239_p0, %p3526_p7 }
 0x1f2   : > { %p2245_p12 = por %p2244_p6, %p2243_p2 }
 0x1f3   : > { %p2241_p11 = pneg %p2240_p8 }
 0x1f5   : > { %p2246_p9 = pnand %p2245_p12, %p2241_p11 }
 0x1f7   : > { %2249 = shalt.err (!%p2246_p9)
}
 0x1f8   : > { %2023 = dma.vmem_to_hbm [thread:$0]  (%p3526_p7), %s3287_s18, 128, %s3285_s14, %s1818_s13  }
 0x1f9 PF: > { %s1856_s27 = sand.u32 1, %s2292_s21   ;;  %p3527_p13 = scmp.ne.s32.totalorder %s3428_s28, 0 }
 0x1fa   : > { %p3528_p5 = scmp.ge.s32.totalorder %s2304_s24, 2  ;;  %s1857_s7 = scalar_lea.sflag [#allocation4], %s1856_s27 }
 0x1fc   : > { %p2041_p1 = pnand %p3528_p5, %p3527_p13 }
 0x1fe   : > { %p2042_p3 = pneg %p2041_p1 }
 0x200   : > { %2283 = dma.done.wait (%p2042_p3), %s1857_s7, 128  }
 0x201   : > { %2285 = vsyncadd (%p2042_p3), %s1857_s7, 4294967168  ;;  %s1866_s12 = scalar_lea.sflag [#allocation12], %s1856_s27 }
 0x202   : > { %2287 = dma.done.wait (%p2042_p3), %s1866_s12, 128  }
 0x203   : > { %2289 = vsyncadd (%p2042_p3), %s1866_s12, 4294967168  ;;  %s3529_s30 = sld [smem:[#allocation19_spill]]  ;;  %p27_p7 = scmp.ge.s32.totalorder %s2422_s19, 4  }
 0x204   : > { %s3530_s21 = smov %s2296_s22  ;;  %s3531_s22 = smov %s2300_s23 }
 0x205   : > { %s3533_s24 = smov %s2422_s19  ;;  %29 = sbr.rel (!%p27_p7) target bundleno = 13 (0xd), region = 123 }
 0x209   : > { %s3532_s23 = smov %s3529_s30 }
 0x20a   :  { %1871 = vsyncpa [#allocation3], 1 }
 0x20b   :  { %1873 = vsyncpa [#allocation3 + $0x1], 1 }
 0x20c   :  { %1874 = vsyncpa [#allocation6], 1 }
 0x20d   :  { %1876 = vsyncpa [#allocation6 + $0x1], 1 }
 0x20e   :  { %1877 = vsyncpa [#allocation9], 1 }
 0x20f   :  { %1878 = vsyncpa [#allocation4], 1 }
 0x210   :  { %1880 = vsyncpa [#allocation4 + $0x1], 1 }
 0x211   :  { %1881 = vsyncpa [#allocation12], 1 }
 0x212   :  { %1883 = vsyncpa [#allocation12 + $0x1], 1 }

</bundles_post_ra>
